<compile_context>
chip_gen: v5e
topology: v5e:2x2
jax: 0.10.0
libtpu: 0.0.40
codegen_flags: <defaults>
</compile_context>

<pallas_src>
import functools

import jax
import jax.numpy as jnp
from jax.experimental import pallas as pl
from jax.experimental.pallas import tpu as pltpu


def _prompt_kernel(prefix_ref, ctx_ref, suffix_ref, out_ref):
    # prefix_ref: (block_cls, 1, D)         per-class SOS embeddings
    # ctx_ref:    (n_ctx, D)                shared learned context (VMEM-resident, same block every step)
    # suffix_ref: (block_cls, n_suffix, D)  per-class name + EOS + padding embeddings
    # out_ref:    (block_cls, seq_len, D)
    block_cls = out_ref.shape[0]
    n_ctx, dim = ctx_ref.shape

    ctx_b = jnp.broadcast_to(ctx_ref[...][None], (block_cls, n_ctx, dim))
    # Assemble the whole slab once and write it with a single dense (unmasked) store.
    out_ref[...] = jnp.concatenate(
        [
            prefix_ref[...].astype(out_ref.dtype),
            ctx_b.astype(out_ref.dtype),
            suffix_ref[...].astype(out_ref.dtype),
        ],
        axis=1,
    )
    # TODO(synk): class_token_position in {"middle", "front"} needs per-class name_len-dependent
    # dynamic slicing (scalar-prefetch of name_lens + pl.ds); only the default "end" is implemented.


def _choose_block_cls(n_cls, n_ctx, n_suffix, dim, itemsize,
                      max_block=32, tile_budget_bytes=24 << 20):
    """Pick how many classes to process per grid step.

    Budget covers the double-buffered per-step tiles (prefix + suffix inputs + output),
    which keeps us inside the 32 MiB VMEM limit we request (and well within v7x's 64 MiB
    physical VMEM). Capped at 32 classes per step (already at the HBM roofline).
    """
    seq_len = 1 + n_ctx + n_suffix
    per_cls = (seq_len + n_suffix + 1) * dim * itemsize
    fit = max(1, tile_budget_bytes // (2 * per_cls))
    return int(max(1, min(max_block, n_cls, fit)))


def prompt_learner_forward(ctx, token_prefix, token_suffix, *, block_cls=None):
    """Assemble prompts = cat([prefix, ctx, suffix], dim=1) on TPU via Pallas.

    ctx:          (n_ctx, D)            -- generic (non class-specific) learned context
    token_prefix: (n_cls, 1, D)         -- SOS embedding per class
    token_suffix: (n_cls, n_suffix, D)  -- class tokens + EOS + padding embeddings
    returns:      (n_cls, 1 + n_ctx + n_suffix, D) in token_prefix.dtype
    """
    n_ctx, dim = ctx.shape
    n_cls = token_prefix.shape[0]
    n_suffix = token_suffix.shape[1]
    seq_len = 1 + n_ctx + n_suffix

    out_dtype = token_prefix.dtype
    assert token_suffix.dtype == out_dtype, "prefix/suffix dtypes must match"

    if block_cls is None:
        block_cls = _choose_block_cls(
            n_cls, n_ctx, n_suffix, dim, jnp.dtype(out_dtype).itemsize
        )
    block_cls = int(max(1, min(block_cls, n_cls)))

    # Pad class axis to a multiple of block_cls (tail blocks hold zeros, sliced off below).
    n_pad = (-n_cls) % block_cls
    if n_pad:
        token_prefix = jnp.pad(token_prefix, ((0, n_pad), (0, 0), (0, 0)))
        token_suffix = jnp.pad(token_suffix, ((0, n_pad), (0, 0), (0, 0)))
    n_cls_p = n_cls + n_pad

    out = pl.pallas_call(
        _prompt_kernel,
        out_shape=jax.ShapeDtypeStruct((n_cls_p, seq_len, dim), out_dtype),
        grid_spec=pltpu.PrefetchScalarGridSpec(
            num_scalar_prefetch=0,
            grid=(n_cls_p // block_cls,),
            in_specs=[
                pl.BlockSpec((block_cls, 1, dim), lambda i: (i, 0, 0)),         # prefix (per class-tile)
                pl.BlockSpec((n_ctx, dim), lambda i: (0, 0)),                   # shared ctx, resident
                pl.BlockSpec((block_cls, n_suffix, dim), lambda i: (i, 0, 0)),  # suffix (per class-tile)
            ],
            out_specs=pl.BlockSpec((block_cls, seq_len, dim), lambda i: (i, 0, 0)),
        ),
        compiler_params=pltpu.CompilerParams(
            dimension_semantics=("parallel",),   # class axis is independent -> megacore on v7x
            vmem_limit_bytes=32 << 20,           # raise v5e's 16 MiB scoped default; safe on v6e/v7x
        ),
    )(token_prefix, ctx, token_suffix)

    if n_pad:
        out = out[:n_cls]
    return out


if __name__ == "__main__":
    # Small, CLIP-like synthetic setup (no checkpoint loading):
    #   n_cls classes, n_ctx learned context tokens, ctx_dim embedding width,
    #   seq_len total tokenized prompt length.
    n_cls, n_ctx, ctx_dim, seq_len = 6, 4, 128, 16
    n_suffix = seq_len - 1 - n_ctx

    key = jax.random.PRNGKey(0)
    k_ctx, k_emb = jax.random.split(key)

    # nn.init.normal_(ctx_vectors, std=0.02)
    ctx = (0.02 * jax.random.normal(k_ctx, (n_ctx, ctx_dim))).astype(jnp.float32)

    # Synthetic token embeddings of the tokenized prompts: (n_cls, seq_len, ctx_dim).
    embedding = jax.random.normal(k_emb, (n_cls, seq_len, ctx_dim), dtype=jnp.float32)
    token_prefix = embedding[:, :1, :]             # SOS
    token_suffix = embedding[:, 1 + n_ctx:, :]     # class tokens, EOS, padding

    # Reference (plain JAX) for semantic check.
    ctx_b = jnp.broadcast_to(ctx[None], (n_cls, n_ctx, ctx_dim))
    ref = jnp.concatenate([token_prefix, ctx_b, token_suffix], axis=1)

    # 1) Explicit block_cls that does NOT divide n_cls -> exercises the class-padding path.
    prompts = prompt_learner_forward(ctx, token_prefix, token_suffix, block_cls=4)
    prompts = jax.block_until_ready(prompts)
    assert prompts.shape == (n_cls, seq_len, ctx_dim), prompts.shape
    assert prompts.dtype == ref.dtype
    assert jnp.allclose(prompts, ref), "Pallas output mismatch vs reference (block_cls=4)"

    # 2) Auto-sized class tile (default path).
    prompts2 = jax.block_until_ready(prompt_learner_forward(ctx, token_prefix, token_suffix))
    assert jnp.allclose(prompts2, ref), "Pallas output mismatch vs reference (auto block_cls)"

    print("KERNEL_OK")
</pallas_src>

<mosaic_0001>
module attributes {stable_mosaic.version = 11 : i64} {
  func.func @_prompt_kernel(%arg0: i32, %arg1: memref<4x1x128xf32, #tpu.memory_space<vmem>>, %arg2: memref<4x128xf32, #tpu.memory_space<vmem>>, %arg3: memref<4x11x128xf32, #tpu.memory_space<vmem>>, %arg4: memref<4x16x128xf32, #tpu.memory_space<vmem>>) attributes {dimension_semantics = [#tpu.dimension_semantics<parallel>], iteration_bounds = array<i64: 2>, scalar_prefetch = 0 : i64, scratch_operands = 0 : i64, tpu.core_type = #tpu.core_type<tc>, window_params = [{transform_indices = @transform_0, window_bounds = array<i64: 4, 1, 128>}, {pipeline_mode = #tpu.pipeline_mode<synchronous>, transform_indices = @transform_1, window_bounds = array<i64: 4, 128>}, {transform_indices = @transform_2, window_bounds = array<i64: 4, 11, 128>}, {transform_indices = @transform_3, window_bounds = array<i64: 4, 16, 128>}]} {
    %c0 = arith.constant 0 : index
    %c0_0 = arith.constant 0 : index
    %0 = vector.load %arg2[%c0, %c0_0] : memref<4x128xf32, #tpu.memory_space<vmem>>, vector<4x128xf32>
    %1 = vector.shape_cast %0 : vector<4x128xf32> to vector<1x4x128xf32>
    %2 = vector.shape_cast %1 : vector<1x4x128xf32> to vector<1x4x128xf32>
    %3 = vector.broadcast %2 : vector<1x4x128xf32> to vector<4x4x128xf32>
    %c0_1 = arith.constant 0 : index
    %c0_2 = arith.constant 0 : index
    %c0_3 = arith.constant 0 : index
    %4 = vector.load %arg1[%c0_1, %c0_2, %c0_3] : memref<4x1x128xf32, #tpu.memory_space<vmem>>, vector<4x1x128xf32>
    %c0_4 = arith.constant 0 : index
    %c0_5 = arith.constant 0 : index
    %c0_6 = arith.constant 0 : index
    %5 = vector.load %arg3[%c0_4, %c0_5, %c0_6] : memref<4x11x128xf32, #tpu.memory_space<vmem>>, vector<4x11x128xf32>
    %6 = tpu.concatenate %4, %3, %5 in 1 : vector<4x1x128xf32>, vector<4x4x128xf32>, vector<4x11x128xf32> -> vector<4x16x128xf32>
    %c0_7 = arith.constant 0 : index
    %c0_8 = arith.constant 0 : index
    %c0_9 = arith.constant 0 : index
    %7 = vector.load %arg4[%c0_7, %c0_8, %c0_9] : memref<4x16x128xf32, #tpu.memory_space<vmem>>, vector<4x16x128xf32>
    tpu.vector_store %arg4[%c0_7, %c0_8, %c0_9], %6 {strides = array<i32>} : memref<4x16x128xf32, #tpu.memory_space<vmem>>, vector<4x16x128xf32>,
    return
  }
  func.func @transform_0(%arg0: i32) -> (i32, i32, i32) {
    %c0_i32 = arith.constant 0 : i32
    %c0_i32_0 = arith.constant 0 : i32
    %c0_i32_1 = arith.constant 0 : i32
    return %arg0, %c0_i32, %c0_i32_0 : i32, i32, i32
  }
  func.func @transform_1(%arg0: i32) -> (i32, i32) {
    %c0_i32 = arith.constant 0 : i32
    %c0_i32_0 = arith.constant 0 : i32
    %c0_i32_1 = arith.constant 0 : i32
    return %c0_i32, %c0_i32_0 : i32, i32
  }
  func.func @transform_2(%arg0: i32) -> (i32, i32, i32) {
    %c0_i32 = arith.constant 0 : i32
    %c0_i32_0 = arith.constant 0 : i32
    %c0_i32_1 = arith.constant 0 : i32
    return %arg0, %c0_i32, %c0_i32_0 : i32, i32, i32
  }
  func.func @transform_3(%arg0: i32) -> (i32, i32, i32) {
    %c0_i32 = arith.constant 0 : i32
    %c0_i32_0 = arith.constant 0 : i32
    %c0_i32_1 = arith.constant 0 : i32
    return %arg0, %c0_i32, %c0_i32_0 : i32, i32, i32
  }
}

</mosaic_0001>

<bundles_post_ra>
// kernel: tpu_custom_call.1
= control target key start
LH: loop header
LB: loop body
LE: loop exit
PB: predicated region body
PF: predicated region fallthrough
CT: control target
= control target key end

     0   :  { %8 = vsyncpa [#allocation3], 0  ;;  %s598_s0 = inlined_call_operand.vmem [shape: f32[8,1,128], index: 0, kind: input, shape index: {}]   ;;  %s599_s1 = inlined_call_operand.vmem [shape: f32[4,128], index: 1, kind: input, shape index: {}]   ;;  %s600_s2 = inlined_call_operand.vmem [shape: f32[8,11,128], index: 2, kind: input, shape index: {}]   ;;  %s601_s3 = inlined_call_operand.hbm [shape: f32[8,16,128], index: 3, kind: output, shape index: {}]  }
   0x1   :  { %10 = vsyncpa [#allocation3 + $0x1], 0  ;;  %s489_s12 = smov 0   ;;  %s491_s13 = smov 0  }
   0x2   :  { %s493_s14 = smov 0   ;;  %s495_s15 = smov 0  }
   0x3 LB: > { %s510_s16 = sadd.s32 4294967295, %s465_s15   ;;  %s344_s17 = sadd.s32 4294967294, %s465_s15   ;;  %s465_s15 = sphi %s495_s15, %s607_s15   ;;  %s461_s14 = sphi %s493_s14, %s606_s14   ;;  %s457_s13 = sphi %s491_s13, %s605_s13   ;;  %s453_s12 = sphi %s489_s12, %s604_s12  }
   0x4   : > { %s514_s18 = sadd.s32 1, %s465_s15   ;;  %s96_s19 = sadd.s32 1, %s461_s14 }
   0x5   : > { %s93_s20 = ssub.s32 %s465_s15, %s514_s18  ;;  %p106_p0 = scmp.ne.s32.totalorder %s461_s14, %s457_s13 }
   0x6   : > { %p94_p1 = scmp.eq.s32.totalorder %s93_s20, 0  ;;  %p107_p2 = scmp.eq.s32.totalorder %s510_s16, 1 }
   0x7   : > { %p112_p3 = scmp.ne.s32.totalorder %s457_s13, %s453_s12  ;;  %p113_p4 = scmp.eq.s32.totalorder %s344_s17, 1 }
   0x8   : > { %s525_s21 = scalar_select %p94_p1, %s461_s14, %s96_s19  }
   0x9   : > { %p527_p5 = por %p107_p2, %p106_p0  ;;  %p531_p6 = por %p113_p4, %p112_p3 }
   0xa   : > { %p347_p7 = scmp.ge.s32.totalorder %s465_s15, 1  ;;  %p152_p8 = scmp.lt.s32.totalorder %s465_s15, 3 }
   0xc   : > { %p153_p9 = pnand %p347_p7, %p152_p8 }
   0xd   : > { %s349_s24 = sshll.u32 (!%p153_p9), %s510_s16, 2  ;;  %s178_s27 = sand.u32 (!%p153_p9), 1, %s457_s13  }
   0xe   : > { %156 = sbr.rel (%p153_p9) target bundleno = 37 (0x25), region = 32  ;;  %p182_p10 = scmp.lt.s32.totalorder (!%p153_p9), %s349_s24, 7 }
   0xf   : > { %s544_s28 = sshll.u32 (!%p153_p9), %s178_s27, 6  ;;  %s361_s9 = sshll.u32 (!%p153_p9), %s510_s16, 6 }
  0x10   : > { %s269_s16 = scalar_lea.hbm (!%p153_p9), %s601_s3, %s361_s9  ;;  %s180_s17 = scalar_lea.vmem (!%p153_p9), [#allocation2], %s544_s28 }
  0x11   : > { %s270_s19 = sshll.u32 (!%p153_p9), %s180_s17, 4  ;;  %s272_s20 = sshll.u32 (!%p153_p9), %s269_s16, 4  ;;  %s271_s19 = int_to_ptr.vmem [resolvable:$true] %s270_s19  ;;  %s273_s20 = int_to_ptr.hbm [resolvable:$true] %s272_s20 }
  0x12   : > { %s417_s25 = sshra.s32 (!%p153_p9), %s273_s20, 4  ;;  %s423_s30 = scalar_lea.hbm (!%p153_p9), %s601_s3, 128  ;;  %s418_s25 = int_to_ptr.hbm [resolvable:$true] %s417_s25 }
  0x13   : > { %v194_v0 = vld [vmem:[%s599_s1] sm:$0xf]  ;;  %s609_s24 = smov (!%p182_p10, %s349_s24), 7  ;;  %vm239_vm0 = vcmask 1040384   ;;  %vm218_vm1 = vcmask 1044480   ;;  %s419_s26 = scalar_lea.hbm %s418_s25, 64 }
  0x14   : > { %v208_v1 = vrot.slane %v194_v0, 7  ;;  %s184_s4 = scalar_lea.vmem %s598_s0, %s609_s24  ;;  %s359_s5 = sshll.u32 %s609_s24, 4 }
  0x15   : > { %s191_s8 = scalar_lea.vmem %s600_s2, %s359_s5  ;;  %v195_v2 = vld [vmem:[%s184_s4] sm:$0x1]  ;;  %v196_v3 = vld [vmem:[%s184_s4 + $0x1] sm:$0x1]  ;;  %v197_v4 = vld [vmem:[%s184_s4 + $0x2] sm:$0x1]  ;;  %p420_p11 = scmp.ne.s32.totalorder %s418_s25, %s419_s26 }
  0x16   : > { %v199_v5 = vld [vmem:[%s191_s8] sm:$0xff]  ;;  %v240_v6 = vsel %vm239_vm0, %v195_v2, %v208_v1  ;;  %v200_v7 = vld [vmem:[%s191_s8 + $0x8] sm:$0x7]  ;;  %v201_v8 = vld [vmem:[%s191_s8 + $0x10] sm:$0xff]  ;;  %v241_v9 = vsel %vm239_vm0, %v196_v3, %v208_v1  ;;  %v242_v17 = vsel %vm239_vm0, %v197_v4, %v208_v1  ;;  %s257_s24 = scalar_lea.sflag [#allocation3], %s178_s27  ;;  %p424_p0 = scmp.lt.s32.totalorder %s418_s25, %s601_s3 }
  0x17   : > { %v219_v10 = vrot.slane %v199_v5, 3  ;;  %v220_v11 = vrot.slane %v200_v7, 3  ;;  %v222_v12 = vrot.slane %v201_v8, 3  ;;  %v202_v13 = vld [vmem:[%s191_s8 + $0x18] sm:$0x7]  ;;  %v203_v14 = vld [vmem:[%s191_s8 + $0x20] sm:$0xff]  ;;  %p421_p12 = pnand %p420_p11, %p527_p5  ;;  %p425_p1 = scmp.lt.s32.totalorder %s423_s30, %s419_s26 }
  0x18   : > { %v223_v15 = vrot.slane %v202_v13, 3  ;;  %v225_v16 = vrot.slane %v203_v14, 3  ;;  %v204_v18 = vld [vmem:[%s191_s8 + $0x28] sm:$0x7]  ;;  %v198_v19 = vld [vmem:[%s184_s4 + $0x3] sm:$0x1] }
  0x19   : > { %v244_v20 = vsel %vm218_vm1, %v240_v6, %v219_v10  ;;  %v221_v21 = vsel %vm218_vm1, %v219_v10, %v220_v11  ;;  %v245_v22 = vsel %vm218_vm1, %v241_v9, %v222_v12  ;;  %v226_v23 = vrot.slane %v204_v18, 3  ;;  %v205_v24 = vld [vmem:[%s191_s8 + $0x30] sm:$0xff]  ;;  %v206_v25 = vld [vmem:[%s191_s8 + $0x38] sm:$0x7]  ;;  %p422_p13 = pneg %p421_p12  ;;  %p426_p2 = por %p425_p1, %p424_p0 }
  0x1a   : > { %248 = vst [vmem:[%s180_s17] sm:$0xff] %v244_v20  ;;  %v224_v26 = vsel %vm218_vm1, %v222_v12, %v223_v15  ;;  %v228_v27 = vrot.slane %v205_v24, 3  ;;  %v243_v28 = vsel %vm239_vm0, %v198_v19, %v208_v1  ;;  %v246_v29 = vsel %vm218_vm1, %v242_v17, %v225_v16 }
  0x1b   : > { %249 = vst [vmem:[%s180_s17 + $0x8] sm:$0xff] %v221_v21  ;;  %v229_v30 = vrot.slane %v206_v25, 3  ;;  %v227_v31 = vsel %vm218_vm1, %v225_v16, %v226_v23  ;;  %p427_p3 = pnand %p426_p2, %p422_p13 }
  0x1c   : > { %250 = vst [vmem:[%s180_s17 + $0x10] sm:$0xff] %v245_v22  ;;  %v247_v32 = vsel %vm218_vm1, %v243_v28, %v228_v27 }
  0x1d   : > { %251 = vst [vmem:[%s180_s17 + $0x18] sm:$0xff] %v224_v26  ;;  %v230_v33 = vsel %vm218_vm1, %v228_v27, %v229_v30 }
  0x1e   : > { %252 = vst [vmem:[%s180_s17 + $0x20] sm:$0xff] %v246_v29 }
  0x1f   : > { %253 = vst [vmem:[%s180_s17 + $0x28] sm:$0xff] %v227_v31 }
  0x20   : > { %254 = vst [vmem:[%s180_s17 + $0x30] sm:$0xff] %v247_v32 }
  0x21   : > { %255 = vst [vmem:[%s180_s17 + $0x38] sm:$0xff] %v230_v33 }
  0x22   : > { %430 = shalt.err (!%p427_p3)
}
  0x23   : > { %s467_s27 = smov 128   ;;  %s468_s6 = smov 8  }
  0x24   : > { %362 = dma.vmem_to_hbm [thread:$0]  (%p527_p5), %s271_s19, 1024, %s273_s20, %s257_s24, %s467_s27, %s467_s27, %s468_s6  }
  0x25 PF: > { %p368_p4 = scmp.ge.s32.totalorder %s465_s15, 2  ;;  %s287_s7 = sand.u32 1, %s453_s12  }
  0x26   : > { %s288_s8 = scalar_lea.sflag [#allocation3], %s287_s7 }
  0x27   : > { %p365_p7 = pnand %p368_p4, %p531_p6 }
  0x29   : > { %p366_p8 = pneg %p365_p7 }
  0x2b   : > { %448 = dma.done.wait (%p366_p8), %s288_s8, 1024  }
  0x2c   : > { %450 = vsyncadd (%p366_p8), %s288_s8, 4294966272  ;;  %p13_p9 = scmp.ge.s32.totalorder %s514_s18, 4   ;;  %s604_s12 = smov %s457_s13 }
  0x2d   : > { %s605_s13 = smov %s461_s14  ;;  %s606_s14 = smov %s525_s21 }
  0x2e   : > { %s607_s15 = smov %s514_s18  ;;  %15 = sbr.rel (!%p13_p9) target bundleno = 3 (0x3), region = 70 }
  0x33   :  { %294 = vsyncpa [#allocation3], 1 }
  0x34   :  { %296 = vsyncpa [#allocation3 + $0x1], 1 }

</bundles_post_ra>
